<compile_context>
chip_gen: v6e
topology: v6e:2x2x1
jax: 0.10.0
libtpu: 0.0.40
codegen_flags: <defaults>
</compile_context>

<pallas_src>
import functools

import jax
import jax.numpy as jnp
from jax import lax
from jax.experimental import pallas as pl
from jax.experimental.pallas import tpu as pltpu

ITER_N = 5                        # MPNCOV.SqrtmLayer(cov_mat, 5)
_VMEM_LIMIT = 48 * 1024 * 1024    # explicit scoped-VMEM cap (< v7x 64 MiB physical)
_TILE_BUDGET = 24 * 1024 * 1024   # bytes of buffered (c, tile) traffic per grid step


def _round_up(n, mult):
    return ((n + mult - 1) // mult) * mult


def _choose_spatial_tile(m, c, itemsize):
    """Lane-aligned tile (multiple of 128) along the flattened h*w axis,
    sized so ~6 double-buffered (c, tile) copies stay well inside VMEM."""
    per_lane = max(1, 6 * c * itemsize)
    cap = max(128, (_TILE_BUDGET // per_lane) // 128 * 128)
    return int(min(_round_up(m, 128), cap, 2048))


def _flatten_pad(x4, m_pad):
    """(b,c,h,w) -> (b,c,m_pad); zero padding is benign for the cov sums."""
    b, c = x4.shape[0], x4.shape[1]
    xf = x4.reshape(b, c, -1)
    m = xf.shape[-1]
    if m_pad > m:
        xf = jnp.pad(xf, ((0, 0), (0, 0), (0, m_pad - m)))
    return xf


def soca_stats_kernel(xs_ref, w1_ref, b1_ref, w2_ref, b2_ref, y_ref,
                      xx_acc, rs_col, rs_row, *, inv_ms):
    j = pl.program_id(1)

    # ---- init accumulators on the first spatial tile of each batch elem ----
    @pl.when(j == 0)
    def _():
        xx_acc[...] = jnp.zeros_like(xx_acc)
        rs_col[...] = jnp.zeros_like(rs_col)
        rs_row[...] = jnp.zeros_like(rs_row)

    # ---- per-tile accumulation (overlaps with the next tile's DMA) ----
    xt = xs_ref[0]                                   # (c, tMs) in input dtype
    xx_acc[...] += lax.dot_general(xt, xt, (((1,), (1,)), ((), ())),
                                   preferred_element_type=jnp.float32)
    xt32 = xt.astype(jnp.float32)
    rs_col[...] += jnp.sum(xt32, axis=1, keepdims=True)          # (c, 1)
    ones_row = jnp.ones((1, xt.shape[1]), jnp.float32)
    rs_row[...] += lax.dot_general(ones_row, xt32, (((1,), (1,)), ((), ())),
                                   preferred_element_type=jnp.float32)  # (1, c)

    # ---- finalize on the last tile: cov -> sqrtm -> MLP -> sigmoid gate ----
    @pl.when(j == pl.num_programs(1) - 1)
    def _():
        c = xx_acc.shape[0]
        xx = xx_acc[...]
        # VPU broadcast outer product (no K=1 MXU matmul on the critical path).
        ss = rs_col[...] * rs_row[...]                           # (c, c)
        cov = (xx - ss * inv_ms) * inv_ms                        # CovpoolLayer

        rows = lax.broadcasted_iota(jnp.int32, (c, c), 0)
        cols = lax.broadcasted_iota(jnp.int32, (c, c), 1)
        eye = (rows == cols).astype(jnp.float32)
        i3 = 3.0 * eye
        # normA = trace(cov); PyTorch reference has no epsilon guard either.
        norm_a = jnp.sum(cov * eye, keepdims=True)               # (1, 1)
        a = cov / norm_a

        # Newton-Schulz iteration (5 iters), tiny latency-bound MXU chain.
        # (For large b with small c this could be batched across batch elems.)
        zy = 0.5 * (i3 - a)
        y_mat = jnp.dot(a, zy, preferred_element_type=jnp.float32)
        z_mat = zy
        for _ in range(1, ITER_N - 1):
            zy = 0.5 * (i3 - jnp.dot(z_mat, y_mat,
                                     preferred_element_type=jnp.float32))
            y_new = jnp.dot(y_mat, zy, preferred_element_type=jnp.float32)
            z_new = jnp.dot(zy, z_mat, preferred_element_type=jnp.float32)
            y_mat, z_mat = y_new, z_new
        zy = 0.5 * jnp.dot(
            y_mat, i3 - jnp.dot(z_mat, y_mat, preferred_element_type=jnp.float32),
            preferred_element_type=jnp.float32)
        cov_sqrt = zy * jnp.sqrt(norm_a)                         # (c, c)

        # torch.mean(cov_mat_sqrt, dim=1) on the (b, c, c) tensor reduces the
        # FIRST c axis (row index i): out[k] = (1/c) * sum_i sqrt[i, k].
        # That is an axis-0 contraction of the per-batch matrix (kept exactly,
        # even though the matvec is in transposed form -- it is tiny).
        ones_col = jnp.full((c, 1), 1.0 / c, dtype=jnp.float32)
        v = lax.dot_general(cov_sqrt, ones_col, (((0,), (0,)), ((), ())),
                            preferred_element_type=jnp.float32)  # (c, 1)

        # conv_du: 1x1 conv -> ReLU -> 1x1 conv -> sigmoid on (c,1,1).
        h1 = jnp.dot(w1_ref[...].astype(jnp.float32), v,
                     preferred_element_type=jnp.float32) + b1_ref[...].astype(jnp.float32)
        h1 = jnp.maximum(h1, 0.0)
        y = jnp.dot(w2_ref[...].astype(jnp.float32), h1,
                    preferred_element_type=jnp.float32) + b2_ref[...].astype(jnp.float32)
        y = jax.nn.sigmoid(y)                                    # (c, 1)
        y_ref[0] = y.astype(y_ref.dtype)


def soca_scale_kernel(y_ref, x_ref, o_ref):
    # Per-channel scale of a lane-aligned spatial tile, in the input dtype
    # (only the tiny (c,1) gate vector is cast).
    o_ref[0] = y_ref[0].astype(x_ref.dtype) * x_ref[0]


def soca_forward(x, w1, b1, w2, b2):
    """x: (b, c, h, w) NCHW. w1:(c//r, c), b1:(c//r,1), w2:(c, c//r), b2:(c,1)."""
    b, c, h, w = x.shape
    c_r = w1.shape[0]

    # ---- centre crop to at most 1000x1000 (same control flow as PyTorch) ----
    h_cap, w_cap = 1000, 1000
    if h < h_cap and w < w_cap:
        x_sub = x
    elif h < h_cap and w > w_cap:
        off_w = (w - w_cap) // 2
        x_sub = x[:, :, :, off_w:off_w + w_cap]
    elif w < w_cap and h > h_cap:
        off_h = (h - h_cap) // 2
        x_sub = x[:, :, off_h:off_h + h_cap, :]
    else:
        off_h = (h - h_cap) // 2
        off_w = (w - w_cap) // 2
        x_sub = x[:, :, off_h:off_h + h_cap, off_w:off_w + w_cap]

    m = h * w
    ms = x_sub.shape[2] * x_sub.shape[3]
    itemsize = x.dtype.itemsize

    # ---- lane-aligned tiling / padding of the flattened spatial axis ----
    tms = _choose_spatial_tile(ms, c, itemsize)
    ms_pad = _round_up(ms, tms)
    xs_flat = _flatten_pad(x_sub, ms_pad)
    if x_sub.shape == x.shape:
        # Crop is a no-op (common case): reuse the same padded array, so x is
        # not duplicated in HBM and each pass streams it exactly once.
        tm, m_pad, x_flat = tms, ms_pad, xs_flat
    else:
        tm = _choose_spatial_tile(m, c, itemsize)
        m_pad = _round_up(m, tm)
        x_flat = _flatten_pad(x, m_pad)

    # ---- pass 1: covariance stats + Newton-Schulz + MLP gate (b, c, 1) ----
    n_s = ms_pad // tms
    gate = pl.pallas_call(
        functools.partial(soca_stats_kernel, inv_ms=1.0 / float(ms)),
        out_shape=jax.ShapeDtypeStruct((b, c, 1), jnp.float32),
        grid_spec=pltpu.PrefetchScalarGridSpec(
            num_scalar_prefetch=0,
            grid=(b, n_s),
            in_specs=[
                pl.BlockSpec((1, c, tms), lambda i, j: (i, 0, j)),   # x_sub tile
                pl.BlockSpec((c_r, c), lambda i, j: (0, 0)),         # w1
                pl.BlockSpec((c_r, 1), lambda i, j: (0, 0)),         # b1
                pl.BlockSpec((c, c_r), lambda i, j: (0, 0)),         # w2
                pl.BlockSpec((c, 1), lambda i, j: (0, 0)),           # b2
            ],
            out_specs=pl.BlockSpec((1, c, 1), lambda i, j: (i, 0, 0)),
            scratch_shapes=[
                pltpu.VMEM((c, c), jnp.float32),   # xx accumulator
                pltpu.VMEM((c, 1), jnp.float32),   # row-sum (sublane layout)
                pltpu.VMEM((1, c), jnp.float32),   # row-sum (lane layout)
            ]),
        compiler_params=pltpu.CompilerParams(
            dimension_semantics=("parallel", "arbitrary"),
            vmem_limit_bytes=_VMEM_LIMIT),
    )(xs_flat, w1, b1, w2, b2)

    # ---- pass 2: per-channel scale of the full-resolution input ----
    n_m = m_pad // tm
    out_flat = pl.pallas_call(
        soca_scale_kernel,
        out_shape=jax.ShapeDtypeStruct((b, c, m_pad), x.dtype),
        grid_spec=pltpu.PrefetchScalarGridSpec(
            num_scalar_prefetch=0,
            grid=(b, n_m),
            in_specs=[
                pl.BlockSpec((1, c, 1), lambda i, j: (i, 0, 0)),     # gate
                pl.BlockSpec((1, c, tm), lambda i, j: (i, 0, j)),    # x tile
            ],
            out_specs=pl.BlockSpec((1, c, tm), lambda i, j: (i, 0, j)),
        ),
        compiler_params=pltpu.CompilerParams(
            dimension_semantics=("parallel", "parallel"),
            vmem_limit_bytes=_VMEM_LIMIT),
    )(gate, x_flat)

    return out_flat[:, :, :m].reshape(b, c, h, w)


if __name__ == "__main__":
    # Small shapes consistent with the module (channel divisible by reduction=8).
    b, c, h, w = 2, 16, 16, 16
    reduction = 8
    c_r = c // reduction

    key = jax.random.PRNGKey(0)
    k_x, k_w1, k_b1, k_w2, k_b2 = jax.random.split(key, 5)

    x = jax.random.normal(k_x, (b, c, h, w), dtype=jnp.float32)

    # Conv2d weights (out, in, 1, 1) stored squeezed as (out, in); bias as (out, 1).
    w1 = 0.2 * jax.random.normal(k_w1, (c_r, c), dtype=jnp.float32)
    b1 = 0.1 * jax.random.normal(k_b1, (c_r, 1), dtype=jnp.float32)
    w2 = 0.2 * jax.random.normal(k_w2, (c, c_r), dtype=jnp.float32)
    b2 = 0.1 * jax.random.normal(k_b2, (c, 1), dtype=jnp.float32)

    out = soca_forward(x, w1, b1, w2, b2)
    jax.block_until_ready(out)
    assert out.shape == (b, c, h, w)
    print("KERNEL_OK")
</pallas_src>

<mosaic_0001>
module attributes {stable_mosaic.version = 11 : i64} {
  func.func @soca_stats_kernel(%arg0: i32, %arg1: i32, %arg2: memref<1x16x256xf32, #tpu.memory_space<vmem>>, %arg3: memref<2x16xf32, #tpu.memory_space<vmem>>, %arg4: memref<2x1xf32, #tpu.memory_space<vmem>>, %arg5: memref<16x2xf32, #tpu.memory_space<vmem>>, %arg6: memref<16x1xf32, #tpu.memory_space<vmem>>, %arg7: memref<1x16x1xf32, #tpu.memory_space<vmem>>, %arg8: memref<16x16xf32, #tpu.memory_space<vmem>>, %arg9: memref<16x1xf32, #tpu.memory_space<vmem>>, %arg10: memref<1x16xf32, #tpu.memory_space<vmem>>) attributes {dimension_semantics = [#tpu.dimension_semantics<parallel>, #tpu.dimension_semantics<arbitrary>], iteration_bounds = array<i64: 2, 1>, scalar_prefetch = 0 : i64, scratch_operands = 3 : i64, tpu.core_type = #tpu.core_type<tc>, window_params = [{transform_indices = @transform_0, window_bounds = array<i64: 1, 16, 256>}, {pipeline_mode = #tpu.pipeline_mode<synchronous>, transform_indices = @transform_1, window_bounds = array<i64: 2, 16>}, {pipeline_mode = #tpu.pipeline_mode<synchronous>, transform_indices = @transform_2, window_bounds = array<i64: 2, 1>}, {pipeline_mode = #tpu.pipeline_mode<synchronous>, transform_indices = @transform_3, window_bounds = array<i64: 16, 2>}, {pipeline_mode = #tpu.pipeline_mode<synchronous>, transform_indices = @transform_4, window_bounds = array<i64: 16, 1>}, {transform_indices = @transform_5, window_bounds = array<i64: 1, 16, 1>}]} {
    %c0_i32 = arith.constant 0 : i32
    %0 = arith.cmpi eq, %arg1, %c0_i32 : i32
    %1 = arith.extui %0 : i1 to i32
    %c0_i32_0 = arith.constant 0 : i32
    %2 = arith.cmpi ne, %1, %c0_i32_0 : i32
    scf.if %2 {
      %cst_20 = arith.constant 0.000000e+00 : f32
      %22 = vector.broadcast %cst_20 : f32 to vector<16x16xf32>
      %c0_21 = arith.constant 0 : index
      %c0_22 = arith.constant 0 : index
      %23 = vector.load %arg8[%c0_21, %c0_22] : memref<16x16xf32, #tpu.memory_space<vmem>>, vector<16x16xf32>
      tpu.vector_store %arg8[%c0_21, %c0_22], %22 {strides = array<i32>} : memref<16x16xf32, #tpu.memory_space<vmem>>, vector<16x16xf32>,
      %cst_23 = arith.constant 0.000000e+00 : f32
      %24 = vector.broadcast %cst_23 : f32 to vector<16x1xf32>
      %c0_24 = arith.constant 0 : index
      %c0_25 = arith.constant 0 : index
      %25 = vector.load %arg9[%c0_24, %c0_25] : memref<16x1xf32, #tpu.memory_space<vmem>>, vector<16x1xf32>
      tpu.vector_store %arg9[%c0_24, %c0_25], %24 {strides = array<i32>} : memref<16x1xf32, #tpu.memory_space<vmem>>, vector<16x1xf32>,
      %cst_26 = arith.constant 0.000000e+00 : f32
      %26 = vector.broadcast %cst_26 : f32 to vector<1x16xf32>
      %c0_27 = arith.constant 0 : index
      %c0_28 = arith.constant 0 : index
      %27 = vector.load %arg10[%c0_27, %c0_28] : memref<1x16xf32, #tpu.memory_space<vmem>>, vector<1x16xf32>
      tpu.vector_store %arg10[%c0_27, %c0_28], %26 {strides = array<i32>} : memref<1x16xf32, #tpu.memory_space<vmem>>, vector<1x16xf32>,
    } else {
    }
    %c0 = arith.constant 0 : index
    %c0_1 = arith.constant 0 : index
    %c0_2 = arith.constant 0 : index
    %3 = vector.load %arg2[%c0, %c0_1, %c0_2] : memref<1x16x256xf32, #tpu.memory_space<vmem>>, vector<1x16x256xf32>
    %4 = vector.shape_cast %3 : vector<1x16x256xf32> to vector<16x256xf32>
    %c0_3 = arith.constant 0 : index
    %c0_4 = arith.constant 0 : index
    %5 = vector.load %arg8[%c0_3, %c0_4] : memref<16x16xf32, #tpu.memory_space<vmem>>, vector<16x16xf32>
    %cst = arith.constant dense<0.000000e+00> : vector<16x16xf32>
    %6 = tpu.matmul %4, %4, %cst {dimension_numbers = #tpu.dot_dimension_numbers<[1], [1], [0], [0], [0, 0, 1, 0], [], []>} : vector<16x256xf32>, vector<16x256xf32>, vector<16x16xf32> -> vector<16x16xf32>
    %7 = arith.addf %5, %6 : vector<16x16xf32>
    %c0_5 = arith.constant 0 : index
    %c0_6 = arith.constant 0 : index
    %8 = vector.load %arg8[%c0_5, %c0_6] : memref<16x16xf32, #tpu.memory_space<vmem>>, vector<16x16xf32>
    tpu.vector_store %arg8[%c0_5, %c0_6], %7 {strides = array<i32>} : memref<16x16xf32, #tpu.memory_space<vmem>>, vector<16x16xf32>,
    %c0_7 = arith.constant 0 : index
    %c0_8 = arith.constant 0 : index
    %9 = vector.load %arg9[%c0_7, %c0_8] : memref<16x1xf32, #tpu.memory_space<vmem>>, vector<16x1xf32>
    %cst_9 = arith.constant dense<0.000000e+00> : vector<16xf32>
    %10 = vector.multi_reduction <add>, %4, %cst_9 [1] : vector<16x256xf32> to vector<16xf32>
    %11 = vector.shape_cast %10 : vector<16xf32> to vector<16x1xf32>
    %12 = arith.addf %9, %11 : vector<16x1xf32>
    %c0_10 = arith.constant 0 : index
    %c0_11 = arith.constant 0 : index
    %13 = vector.load %arg9[%c0_10, %c0_11] : memref<16x1xf32, #tpu.memory_space<vmem>>, vector<16x1xf32>
    tpu.vector_store %arg9[%c0_10, %c0_11], %12 {strides = array<i32>} : memref<16x1xf32, #tpu.memory_space<vmem>>, vector<16x1xf32>,
    %cst_12 = arith.constant 1.000000e+00 : f32
    %14 = vector.broadcast %cst_12 : f32 to vector<1x256xf32>
    %c0_13 = arith.constant 0 : index
    %c0_14 = arith.constant 0 : index
    %15 = vector.load %arg10[%c0_13, %c0_14] : memref<1x16xf32, #tpu.memory_space<vmem>>, vector<1x16xf32>
    %cst_15 = arith.constant dense<0.000000e+00> : vector<1x16xf32>
    %16 = tpu.matmul %14, %4, %cst_15 {dimension_numbers = #tpu.dot_dimension_numbers<[1], [1], [0], [0], [0, 0, 1, 0], [], []>} : vector<1x256xf32>, vector<16x256xf32>, vector<1x16xf32> -> vector<1x16xf32>
    %17 = arith.addf %15, %16 : vector<1x16xf32>
    %c0_16 = arith.constant 0 : index
    %c0_17 = arith.constant 0 : index
    %18 = vector.load %arg10[%c0_16, %c0_17] : memref<1x16xf32, #tpu.memory_space<vmem>>, vector<1x16xf32>
    tpu.vector_store %arg10[%c0_16, %c0_17], %17 {strides = array<i32>} : memref<1x16xf32, #tpu.memory_space<vmem>>, vector<1x16xf32>,
    %c0_i32_18 = arith.constant 0 : i32
    %19 = arith.cmpi eq, %arg1, %c0_i32_18 : i32
    %20 = arith.extui %19 : i1 to i32
    %c0_i32_19 = arith.constant 0 : i32
    %21 = arith.cmpi ne, %20, %c0_i32_19 : i32
    scf.if %21 {
      %c0_20 = arith.constant 0 : index
      %c0_21 = arith.constant 0 : index
      %22 = vector.load %arg8[%c0_20, %c0_21] : memref<16x16xf32, #tpu.memory_space<vmem>>, vector<16x16xf32>
      %c0_22 = arith.constant 0 : index
      %c0_23 = arith.constant 0 : index
      %23 = vector.load %arg9[%c0_22, %c0_23] : memref<16x1xf32, #tpu.memory_space<vmem>>, vector<16x1xf32>
      %c0_24 = arith.constant 0 : index
      %c0_25 = arith.constant 0 : index
      %24 = vector.load %arg10[%c0_24, %c0_25] : memref<1x16xf32, #tpu.memory_space<vmem>>, vector<1x16xf32>
      %25 = vector.broadcast %23 : vector<16x1xf32> to vector<16x16xf32>
      %26 = vector.broadcast %24 : vector<1x16xf32> to vector<16x16xf32>
      %27 = arith.mulf %25, %26 : vector<16x16xf32>
      %cst_26 = arith.constant 3.906250e-03 : f32
      %28 = vector.broadcast %cst_26 : f32 to vector<16x16xf32>
      %29 = arith.mulf %27, %28 : vector<16x16xf32>
      %30 = arith.subf %22, %29 : vector<16x16xf32>
      %cst_27 = arith.constant 3.906250e-03 : f32
      %31 = vector.broadcast %cst_27 : f32 to vector<16x16xf32>
      %32 = arith.mulf %30, %31 : vector<16x16xf32>
      %33 = tpu.iota {dimensions = array<i32: 0>} : vector<16x16xi32>
      %34 = tpu.iota {dimensions = array<i32: 1>} : vector<16x16xi32>
      %35 = arith.cmpi eq, %33, %34 : vector<16x16xi32>
      %36 = arith.extui %35 : vector<16x16xi1> to vector<16x16xi32>
      %37 = arith.sitofp %36 : vector<16x16xi32> to vector<16x16xf32>
      %cst_28 = arith.constant 3.000000e+00 : f32
      %38 = vector.broadcast %cst_28 : f32 to vector<16x16xf32>
      %39 = arith.mulf %38, %37 : vector<16x16xf32>
      %40 = arith.mulf %32, %37 : vector<16x16xf32>
      %41 = vector.shape_cast %40 : vector<16x16xf32> to vector<1x16x16xf32>
      %cst_29 = arith.constant dense<0.000000e+00> : vector<1xf32>
      %42 = vector.multi_reduction <add>, %41, %cst_29 [1, 2] : vector<1x16x16xf32> to vector<1xf32>
      %43 = vector.shape_cast %42 : vector<1xf32> to vector<1x1x1xf32>
      %44 = vector.extract %43[0, 0, 0] : f32 from vector<1x1x1xf32>
      %45 = vector.broadcast %44 : f32 to vector<1x1xf32>
      %46 = vector.broadcast %45 : vector<1x1xf32> to vector<16x16xf32>
      %47 = arith.divf %32, %46 : vector<16x16xf32>
      %48 = arith.subf %39, %47 : vector<16x16xf32>
      %cst_30 = arith.constant 5.000000e-01 : f32
      %49 = vector.broadcast %cst_30 : f32 to vector<16x16xf32>
      %50 = arith.mulf %49, %48 : vector<16x16xf32>
      %cst_31 = arith.constant dense<0.000000e+00> : vector<16x16xf32>
      %51 = tpu.matmul %47, %50, %cst_31 {dimension_numbers = #tpu.dot_dimension_numbers<[1], [0], [0], [1], [0, 0, 1, 1], [], []>} : vector<16x16xf32>, vector<16x16xf32>, vector<16x16xf32> -> vector<16x16xf32>
      %cst_32 = arith.constant dense<0.000000e+00> : vector<16x16xf32>
      %52 = tpu.matmul %50, %51, %cst_32 {dimension_numbers = #tpu.dot_dimension_numbers<[1], [0], [0], [1], [0, 0, 1, 1], [], []>} : vector<16x16xf32>, vector<16x16xf32>, vector<16x16xf32> -> vector<16x16xf32>
      %53 = arith.subf %39, %52 : vector<16x16xf32>
      %cst_33 = arith.constant 5.000000e-01 : f32
      %54 = vector.broadcast %cst_33 : f32 to vector<16x16xf32>
      %55 = arith.mulf %54, %53 : vector<16x16xf32>
      %cst_34 = arith.constant dense<0.000000e+00> : vector<16x16xf32>
      %56 = tpu.matmul %51, %55, %cst_34 {dimension_numbers = #tpu.dot_dimension_numbers<[1], [0], [0], [1], [0, 0, 1, 1], [], []>} : vector<16x16xf32>, vector<16x16xf32>, vector<16x16xf32> -> vector<16x16xf32>
      %cst_35 = arith.constant dense<0.000000e+00> : vector<16x16xf32>
      %57 = tpu.matmul %55, %50, %cst_35 {dimension_numbers = #tpu.dot_dimension_numbers<[1], [0], [0], [1], [0, 0, 1, 1], [], []>} : vector<16x16xf32>, vector<16x16xf32>, vector<16x16xf32> -> vector<16x16xf32>
      %cst_36 = arith.constant dense<0.000000e+00> : vector<16x16xf32>
      %58 = tpu.matmul %57, %56, %cst_36 {dimension_numbers = #tpu.dot_dimension_numbers<[1], [0], [0], [1], [0, 0, 1, 1], [], []>} : vector<16x16xf32>, vector<16x16xf32>, vector<16x16xf32> -> vector<16x16xf32>
      %59 = arith.subf %39, %58 : vector<16x16xf32>
      %cst_37 = arith.constant 5.000000e-01 : f32
      %60 = vector.broadcast %cst_37 : f32 to vector<16x16xf32>
      %61 = arith.mulf %60, %59 : vector<16x16xf32>
      %cst_38 = arith.constant dense<0.000000e+00> : vector<16x16xf32>
      %62 = tpu.matmul %56, %61, %cst_38 {dimension_numbers = #tpu.dot_dimension_numbers<[1], [0], [0], [1], [0, 0, 1, 1], [], []>} : vector<16x16xf32>, vector<16x16xf32>, vector<16x16xf32> -> vector<16x16xf32>
      %cst_39 = arith.constant dense<0.000000e+00> : vector<16x16xf32>
      %63 = tpu.matmul %61, %57, %cst_39 {dimension_numbers = #tpu.dot_dimension_numbers<[1], [0], [0], [1], [0, 0, 1, 1], [], []>} : vector<16x16xf32>, vector<16x16xf32>, vector<16x16xf32> -> vector<16x16xf32>
      %cst_40 = arith.constant dense<0.000000e+00> : vector<16x16xf32>
      %64 = tpu.matmul %63, %62, %cst_40 {dimension_numbers = #tpu.dot_dimension_numbers<[1], [0], [0], [1], [0, 0, 1, 1], [], []>} : vector<16x16xf32>, vector<16x16xf32>, vector<16x16xf32> -> vector<16x16xf32>
      %65 = arith.subf %39, %64 : vector<16x16xf32>
      %cst_41 = arith.constant 5.000000e-01 : f32
      %66 = vector.broadcast %cst_41 : f32 to vector<16x16xf32>
      %67 = arith.mulf %66, %65 : vector<16x16xf32>
      %cst_42 = arith.constant dense<0.000000e+00> : vector<16x16xf32>
      %68 = tpu.matmul %62, %67, %cst_42 {dimension_numbers = #tpu.dot_dimension_numbers<[1], [0], [0], [1], [0, 0, 1, 1], [], []>} : vector<16x16xf32>, vector<16x16xf32>, vector<16x16xf32> -> vector<16x16xf32>
      %cst_43 = arith.constant dense<0.000000e+00> : vector<16x16xf32>
      %69 = tpu.matmul %67, %63, %cst_43 {dimension_numbers = #tpu.dot_dimension_numbers<[1], [0], [0], [1], [0, 0, 1, 1], [], []>} : vector<16x16xf32>, vector<16x16xf32>, vector<16x16xf32> -> vector<16x16xf32>
      %cst_44 = arith.constant dense<0.000000e+00> : vector<16x16xf32>
      %70 = tpu.matmul %69, %68, %cst_44 {dimension_numbers = #tpu.dot_dimension_numbers<[1], [0], [0], [1], [0, 0, 1, 1], [], []>} : vector<16x16xf32>, vector<16x16xf32>, vector<16x16xf32> -> vector<16x16xf32>
      %71 = arith.subf %39, %70 : vector<16x16xf32>
      %cst_45 = arith.constant dense<0.000000e+00> : vector<16x16xf32>
      %72 = tpu.matmul %68, %71, %cst_45 {dimension_numbers = #tpu.dot_dimension_numbers<[1], [0], [0], [1], [0, 0, 1, 1], [], []>} : vector<16x16xf32>, vector<16x16xf32>, vector<16x16xf32> -> vector<16x16xf32>
      %cst_46 = arith.constant 5.000000e-01 : f32
      %73 = vector.broadcast %cst_46 : f32 to vector<16x16xf32>
      %74 = arith.mulf %73, %72 : vector<16x16xf32>
      %75 = math.sqrt %45 : vector<1x1xf32>
      %76 = vector.broadcast %75 : vector<1x1xf32> to vector<16x16xf32>
      %77 = arith.mulf %74, %76 : vector<16x16xf32>
      %cst_47 = arith.constant 6.250000e-02 : f32
      %78 = vector.broadcast %cst_47 : f32 to vector<16x1xf32>
      %cst_48 = arith.constant dense<0.000000e+00> : vector<16x1xf32>
      %79 = tpu.matmul %77, %78, %cst_48 {dimension_numbers = #tpu.dot_dimension_numbers<[0], [0], [1], [1], [0, 1, 1, 1], [], []>} : vector<16x16xf32>, vector<16x1xf32>, vector<16x1xf32> -> vector<16x1xf32>
      %c0_49 = arith.constant 0 : index
      %c0_50 = arith.constant 0 : index
      %80 = vector.load %arg3[%c0_49, %c0_50] : memref<2x16xf32, #tpu.memory_space<vmem>>, vector<2x16xf32>
      %cst_51 = arith.constant dense<0.000000e+00> : vector<2x1xf32>
      %81 = tpu.matmul %80, %79, %cst_51 {dimension_numbers = #tpu.dot_dimension_numbers<[1], [0], [0], [1], [0, 0, 1, 1], [], []>} : vector<2x16xf32>, vector<16x1xf32>, vector<2x1xf32> -> vector<2x1xf32>
      %c0_52 = arith.constant 0 : index
      %c0_53 = arith.constant 0 : index
      %82 = vector.load %arg4[%c0_52, %c0_53] : memref<2x1xf32, #tpu.memory_space<vmem>>, vector<2x1xf32>
      %83 = arith.addf %81, %82 : vector<2x1xf32>
      %cst_54 = arith.constant 0.000000e+00 : f32
      %84 = vector.broadcast %cst_54 : f32 to vector<2x1xf32>
      %85 = arith.maximumf %83, %84 : vector<2x1xf32>
      %c0_55 = arith.constant 0 : index
      %c0_56 = arith.constant 0 : index
      %86 = vector.load %arg5[%c0_55, %c0_56] : memref<16x2xf32, #tpu.memory_space<vmem>>, vector<16x2xf32>
      %cst_57 = arith.constant dense<0.000000e+00> : vector<16x1xf32>
      %87 = tpu.matmul %86, %85, %cst_57 {dimension_numbers = #tpu.dot_dimension_numbers<[1], [0], [0], [1], [0, 0, 1, 1], [], []>} : vector<16x2xf32>, vector<2x1xf32>, vector<16x1xf32> -> vector<16x1xf32>
      %c0_58 = arith.constant 0 : index
      %c0_59 = arith.constant 0 : index
      %88 = vector.load %arg6[%c0_58, %c0_59] : memref<16x1xf32, #tpu.memory_space<vmem>>, vector<16x1xf32>
      %89 = arith.addf %87, %88 : vector<16x1xf32>
      %90 = arith.negf %89 : vector<16x1xf32>
      %91 = math.exp %90 : vector<16x1xf32>
      %cst_60 = arith.constant 1.000000e+00 : f32
      %92 = vector.broadcast %cst_60 : f32 to vector<16x1xf32>
      %93 = arith.addf %92, %91 : vector<16x1xf32>
      %94 = arith.divf %92, %93 : vector<16x1xf32>
      %c0_61 = arith.constant 0 : index
      %c0_62 = arith.constant 0 : index
      %c0_63 = arith.constant 0 : index
      %95 = vector.load %arg7[%c0_61, %c0_62, %c0_63] : memref<1x16x1xf32, #tpu.memory_space<vmem>>, vector<1x16x1xf32>
      %96 = vector.shape_cast %95 : vector<1x16x1xf32> to vector<16x1xf32>
      %97 = vector.shape_cast %94 : vector<16x1xf32> to vector<1x16x1xf32>
      tpu.vector_store %arg7[%c0_61, %c0_62, %c0_63], %97 {strides = array<i32>} : memref<1x16x1xf32, #tpu.memory_space<vmem>>, vector<1x16x1xf32>,
    } else {
    }
    return
  }
  func.func @transform_0(%arg0: i32, %arg1: i32) -> (i32, i32, i32) {
    %c0_i32 = arith.constant 0 : i32
    %c0_i32_0 = arith.constant 0 : i32
    return %arg0, %c0_i32, %arg1 : i32, i32, i32
  }
  func.func @transform_1(%arg0: i32, %arg1: i32) -> (i32, i32) {
    %c0_i32 = arith.constant 0 : i32
    %c0_i32_0 = arith.constant 0 : i32
    %c0_i32_1 = arith.constant 0 : i32
    return %c0_i32, %c0_i32_0 : i32, i32
  }
  func.func @transform_2(%arg0: i32, %arg1: i32) -> (i32, i32) {
    %c0_i32 = arith.constant 0 : i32
    %c0_i32_0 = arith.constant 0 : i32
    %c0_i32_1 = arith.constant 0 : i32
    return %c0_i32, %c0_i32_0 : i32, i32
  }
  func.func @transform_3(%arg0: i32, %arg1: i32) -> (i32, i32) {
    %c0_i32 = arith.constant 0 : i32
    %c0_i32_0 = arith.constant 0 : i32
    %c0_i32_1 = arith.constant 0 : i32
    return %c0_i32, %c0_i32_0 : i32, i32
  }
  func.func @transform_4(%arg0: i32, %arg1: i32) -> (i32, i32) {
    %c0_i32 = arith.constant 0 : i32
    %c0_i32_0 = arith.constant 0 : i32
    %c0_i32_1 = arith.constant 0 : i32
    return %c0_i32, %c0_i32_0 : i32, i32
  }
  func.func @transform_5(%arg0: i32, %arg1: i32) -> (i32, i32, i32) {
    %c0_i32 = arith.constant 0 : i32
    %c0_i32_0 = arith.constant 0 : i32
    %c0_i32_1 = arith.constant 0 : i32
    return %arg0, %c0_i32, %c0_i32_0 : i32, i32, i32
  }
}

</mosaic_0001>

<bundles_post_ra>
// kernel: tpu_custom_call.1
= control target key start
LH: loop header
LB: loop body
LE: loop exit
PB: predicated region body
PF: predicated region fallthrough
CT: control target
= control target key end

     0   :  { %10 = vsyncpa [#allocation6], 0  ;;  %s2477_s0 = inlined_call_operand.hbm [shape: f32[2,16,256], index: 0, kind: input, shape index: {}]   ;;  %s2478_s1 = inlined_call_operand.vmem [shape: f32[2,16], index: 1, kind: input, shape index: {}]   ;;  %s2479_s2 = inlined_call_operand.vmem [shape: f32[2,1], index: 2, kind: input, shape index: {}]   ;;  %s2480_s3 = inlined_call_operand.vmem [shape: f32[16,2], index: 3, kind: input, shape index: {}]   ;;  %s2481_s4 = inlined_call_operand.vmem [shape: f32[16,1], index: 4, kind: input, shape index: {}]   ;;  %s2482_s5 = inlined_call_operand.vmem [shape: f32[2,16,1], index: 5, kind: output, shape index: {}]  }
   0x1   :  { %12 = vsyncpa [#allocation6 + $0x1], 0  ;;  %s2289_s18 = smov 0   ;;  %s2291_s19 = smov 0  }
   0x2   :  { %s2293_s20 = smov 0   ;;  %s2295_s21 = smov 0  }
   0x3   :  { %s2297_s22 = smov 0   ;;  %s2299_s23 = smov 0  }
   0x4 LB: > { %s1882_s24 = sadd.s32 4294967295, %s2249_s23   ;;  %s30_s25 = sadd.s32 1, %s2245_s22  ;;  %s2249_s23 = sphi %s2299_s23, %s18_s23   ;;  %s2245_s22 = sphi %s2297_s22, %s2490_s22   ;;  %s2241_s21 = sphi %s2295_s21, %s2489_s21   ;;  %s2237_s20 = sphi %s2293_s20, %s2488_s20   ;;  %s2233_s19 = sphi %s2291_s19, %s2487_s19   ;;  %s2229_s18 = sphi %s2289_s18, %s2486_s18  }
   0x5   : > { %p32_p0 = scmp.ge.s32.totalorder %s30_s25, 2  ;;  %s39_s26 = sadd.s32 1, %s2237_s20 }
   0x6   : > { %p46_p1 = scmp.ne.s32.totalorder %s2237_s20, %s2233_s19  ;;  %p47_p2 = scmp.eq.s32.totalorder %s2249_s23, 0 }
   0x7   : > { %s2492_s25 = smov (%p32_p0, %s30_s25), 0  ;;  %p52_p4 = scmp.ne.s32.totalorder %s2233_s19, %s2229_s18 }
   0x8   : > { %p2325_p3 = por %p47_p2, %p46_p1  ;;  %s34_s28 = ssub.s32 %s2245_s22, %s2492_s25 }
   0x9   : > { %p53_p5 = scmp.eq.s32.totalorder %s1882_s24, 0  ;;  %p37_p6 = scmp.eq.s32.totalorder %s34_s28, 0 }
   0xa   : > { %p2101_p8 = scmp.lt.s32.totalorder %s2249_s23, 2  ;;  %s198_s6 = sand.u32 1, %s2237_s20  }
   0xb   : > { %p2332_p7 = por %p53_p5, %p52_p4  ;;  %s1930_s7 = sshll.u32 %s2245_s22, 9 }
   0xc   : > { %s2338_s30 = scalar_select %p37_p6, %s2237_s20, %s39_s26  }
   0xd   : > { %s1886_s8 = sshll.u32 %s198_s6, 5  ;;  %s210_s11 = scalar_lea.hbm %s2477_s0, %s1930_s7 }
   0xe   : > { %s202_s12 = scalar_lea.vmem [#allocation5], %s1886_s8  ;;  %p2347_p9 = pnand %p2101_p8, %p2325_p3 }
   0xf   : > { %s211_s13 = sshll.u32 %s202_s12, 4  ;;  %s199_s15 = scalar_lea.sflag [#allocation6], %s198_s6  ;;  %s212_s13 = int_to_ptr.vmem [resolvable:$true] %s211_s13 }
  0x10   : > { %p2173_p10 = pneg %p2347_p9  ;;  %s2184_s16 = scalar_lea.vmem %s212_s13, 512 }
  0x11   : > { %p2185_p11 = scmp.ne.s32.totalorder %s212_s13, %s2184_s16  ;;  %s2251_s17 = smov [#allocation5]  }
  0x12   : > { %s2189_s18 = sshll.u32 %s2251_s17, 4  ;;  %s2190_s18 = int_to_ptr.vmem [resolvable:$false] %s2189_s18 }
  0x13   : > { %p2187_p12 = pnand %p2185_p11, %p2173_p10  ;;  %s2191_s24 = scalar_lea.vmem %s2190_s18, 1024 }
  0x14   : > { %p2192_p0 = scmp.lt.s32.totalorder %s212_s13, %s2190_s18  ;;  %p2193_p1 = scmp.lt.s32.totalorder %s2191_s24, %s2184_s16 }
  0x15   : > { %p2188_p13 = pneg %p2187_p12 }
  0x16   : > { %p2194_p2 = por %p2193_p1, %p2192_p0 }
  0x18   : > { %p2195_p3 = pnand %p2194_p2, %p2188_p13 }
  0x1a   : > { %2198 = shalt.err (!%p2195_p3)
}
  0x1b   : > { %s2252_s26 = smov 256   ;;  %s2253_s27 = smov 16  }
  0x1c   : > { %2100 = dma.hbm_to_vmem [thread:$0]  (!%p2347_p9), %s210_s11, 512, %s212_s13, %s199_s15, %s2252_s26, %s2252_s26, %s2253_s27  }
  0x1d   : > { %p1889_p4 = scmp.ge.s32.totalorder %s2249_s23, 1  ;;  %p219_p5 = scmp.lt.s32.totalorder %s2249_s23, 3 }
  0x1f   : > { %p220_p6 = pnand %p1889_p4, %p219_p5 }
  0x20   : > { %s225_s28 = sand.u32 (!%p220_p6), 1, %s2233_s19  }
  0x21   : > { %223 = sbr.rel (%p220_p6) target bundleno = 3099 (0xc1b), region = 40  ;;  %s1890_s6 = sshll.u32 (!%p220_p6), %s225_s28, 5 }
  0x22   : > { %s226_s7 = scalar_lea.sflag (!%p220_p6), [#allocation6], %s225_s28  ;;  %s229_s8 = scalar_lea.vmem (!%p220_p6), [#allocation5], %s1890_s6 }
  0x26   : > { %2224 = dma.done.wait (%p2332_p7), %s226_s7, 512  }
  0x27   : > { %2226 = vsyncadd (%p2332_p7), %s226_s7, 4294966784  ;;  %vm269_vm0 = vcmask 7168   ;;  %v2254_v0 = vmov 1.0   ;;  %v2255_v1 = vmov 0.0   ;;  %v274_v2 = vld [vmem:[%s229_s8] sm:$0xff]  ;;  %v275_v3 = vld [vmem:[%s229_s8 + $0x8] sm:$0xff]  ;;  %v479_v29 = vlaneseq }
  0x28   : > { %438 = vmatprep.mubr.f32.mxu1 %v2254_v0  ;;  %270 = vst.msk [vmem:[#allocation3] sm:$0xff] %vm269_vm0, %v2255_v1  ;;  %271 = vst.msk [vmem:[#allocation3 + $0x8] sm:$0xff] %vm269_vm0, %v2255_v1  ;;  %v276_v4 = vld [vmem:[%s229_s8 + $0x10] sm:$0xff]  ;;  %v362_v5 = vadd.f32 %v275_v3, %v274_v2  ;;  %v277_v6 = vld [vmem:[%s229_s8 + $0x18] sm:$0xff]  ;;  %344 = vmatprep.mubr.f32.mxu0 %v275_v3  ;;  %v2256_v8 = vmov 0   ;;  %vm272_vm1 = vcmask 122880  }
  0x29   : > { %402 = vmatprep.subr.mxu1 %v277_v6  ;;  %308 = vmatprep.subr.mxu0 %v277_v6  ;;  %v365_v7 = vadd.f32 %v277_v6, %v276_v4  ;;  %273 = vst.msk [vmem:[#allocation4] sm:$0x1] %vm272_vm1, %v2255_v1  ;;  %vm266_vm2 = vcmask 130048   ;;  %v480_v33 = vshrl.u32 %v479_v29, 7  ;;  %v483_v34 = vand.u32 127, %v479_v29  ;;  %p257_p7 = scmp.lt.s32.totalorder %s2241_s21, 1 }
  0x2a   : > { %363 = vadd.xlane.f32.xlu0 %v362_v5  ;;  %403 = vmatpush1.xpose.msra.mxu1 %v276_v4  ;;  %267 = vst.msk [vmem:[#allocation2] sm:$0xff] %vm266_vm2, %v2255_v1  ;;  %268 = vst.msk [vmem:[#allocation2 + $0x8] sm:$0xff] %vm266_vm2, %v2255_v1  ;;  %vm2258_vm7 = vmmov 0   ;;  %vm1704_vm8 = vcmask 15360   ;;  %vm1711_vm9 = vcmask 1041408  }
  0x2b   : > { %309 = vmatpush1.xpose.msra.mxu0 %v276_v4  ;;  %404 = vmatprep.subr.mxu1 %v275_v3  ;;  %v481_v37 = vadd.s32 8, %v480_v33  ;;  %vm484_vm3 = vcmp.eq.s32.totalorder %v480_v33, %v483_v34  ;;  %s2494_s21 = smov (!%p257_p7, %s2241_s21), 1 }
  0x2c   : > { %310 = vmatprep.subr.mxu0 %v275_v3  ;;  %2157 = vset.pattern.permute.xlu1 %v2256_v8  ;;  %v1894_v44 = vsel %vm484_vm3, 1.0, %v2255_v1  ;;  %s1931_s27 = sshll.u32 %s2494_s21, 4 }
  0x2d   : > { %2158 = vset.pattern.permute.xlu0 %v2256_v8  ;;  %vm485_vm4 = vcmp.eq.s32.totalorder %v481_v37, %v483_v34  ;;  %v2384_v61 = vmul.f32 3.0, %v1894_v44  ;;  %s261_s7 = scalar_lea.vmem %s2482_s5, %s1931_s27 }
  0x2e   : > { %366 = vadd.xlane.f32.xlu0 %v365_v7  ;;  %405 = vmatpush1.xpose.msra.mxu1 %v274_v2  ;;  %v1895_v46 = vsel %vm485_vm4, 1.0, %v2255_v1 }
  0x2f   : > { %311 = vmatpush1.xpose.msra.mxu0 %v274_v2  ;;  %v360_v9 = vld [vmem:[#allocation3] sm:$0xff]  ;;  %v361_v12 = vld [vmem:[#allocation3 + $0x8] sm:$0xff]  ;;  %v2386_v62 = vmul.f32 3.0, %v1895_v46 }
  0x30   : > { %v373_v17 = vld [vmem:[#allocation4] sm:$0x1] }
  0x31   : > { %439 = vmatmul.mubr.f32.vlgmr.msra.gmra.mxu1 %v2254_v0  ;;  %v278_v18 = vld [vmem:[#allocation2] sm:$0xff]  ;;  %v279_v25 = vld [vmem:[#allocation2 + $0x8] sm:$0xff] }
  0x32   : > { %345 = vmatmul.mubr.f32.vlgmr.msra.gmra.mxu0 %v274_v2 }
  0x33   : > { %349 = vmatprep.mubr.f32.mxu0 %v277_v6 }
  0x36   : > { %350 = vmatmul.mubr.f32.gmra.mxu0 %v276_v4 }
  0xb3   : > { %v364_v10 = vpop.xlane.xlu0 %363 }
  0xb4   : > { %v368_v11 = vadd.f32 %v364_v10, %v360_v9 }
  0xb6   : > { %371 = vst.msk [vmem:[#allocation3] sm:$0xff] %vm269_vm0, %v368_v11 }
  0xb7   : > { %v367_v13 = vpop.xlane.xlu0 %366 }
  0xb8   : > { %v369_v14 = vadd.f32 %v367_v13, %v361_v12 }
  0xba   : > { %372 = vst.msk [vmem:[#allocation3 + $0x8] sm:$0xff] %vm269_vm0, %v369_v14 }
  0xbd   : > { %v452_v15 = vld [vmem:[#allocation3] sm:$0xff] }
  0xbe   : > { %457 = vperm.xlu1 %2157, %v452_v15  }
  0xc1   : > { %v453_v16 = vld [vmem:[#allocation3 + $0x8] sm:$0xff] }
  0xc2   : > { %462 = vperm.xlu1 %2157, %v453_v16  }
  0xf1   : > { %v440_v19 = vpop.f32.mrf.mxu1 }
  0xf2   : > { %v444_v20 = vadd.f32 %v440_v19, %v373_v17  ;;  %v346_v21 = vpop.f32.mrf.mxu0 }
  0xf3   : > { %v355_v22 = vadd.f32 %v346_v21, %v278_v18  ;;  %v442_v23 = vpop.f32.mrf.mxu1 }
  0xf4   : > { %446 = vst.msk [vmem:[#allocation4] sm:$0x1] %vm272_vm1, %v444_v20  ;;  %v348_v24 = vpop.f32.mrf.mxu0 }
  0xf5   : > { %358 = vst.msk [vmem:[#allocation2] sm:$0xff] %vm266_vm2, %v355_v22 }
  0xf6   : > { %v351_v26 = vpop.f32.mrf.mxu0 }
  0xf7   : > { %v356_v27 = vadd.f32 %v351_v26, %v279_v25 }
  0xf8   : > { %v353_v28 = vpop.f32.mrf.mxu0 }
  0xf9   : > { %359 = vst.msk [vmem:[#allocation2 + $0x8] sm:$0xff] %vm266_vm2, %v356_v27 }
  0xfb   : > { %v1893_v30 = vld [vmem:[#allocation4] ss:$0 sm:$0xff] }
  0xfc   : > { %v450_v35 = vld [vmem:[#allocation2] sm:$0xff] }
 0x100   : > { %v451_v41 = vld [vmem:[#allocation2 + $0x8] sm:$0xff] }
 0x139   : > { %v458_v31 = vpop.permute.xlu1 %457 }
 0x13a   : > { %v471_v32 = vmul.f32 %v1893_v30, %v458_v31 }
 0x13c   : > { %v473_v36 = vmul.f32 0.00390625, %v471_v32 }
 0x13d   : > { %v463_v38 = vpop.permute.xlu1 %462 }
 0x13e   : > { %v475_v39 = vsub.f32 %v450_v35, %v473_v36  ;;  %v472_v40 = vmul.f32 %v1893_v30, %v463_v38 }
 0x140   : > { %v477_v42 = vmul.f32 0.00390625, %v475_v39  ;;  %v474_v43 = vmul.f32 0.00390625, %v472_v40 }
 0x142   : > { %v476_v45 = vsub.f32 %v451_v41, %v474_v43  ;;  %v492_v48 = vmul.f32 %v1894_v44, %v477_v42 }
 0x144   : > { %v478_v47 = vmul.f32 0.00390625, %v476_v45  ;;  %v494_v50 = vsel %vm266_vm2, %v492_v48, 0.0 }
 0x146   : > { %v493_v49 = vmul.f32 %v1895_v46, %v478_v47 }
 0x148   : > { %v495_v51 = vsel %vm266_vm2, %v493_v49, 0.0 }
 0x149   : > { %v496_v52 = vadd.f32 %v495_v51, %v494_v50  ;;  %v2257_v51 = vmov 0.0625  }
 0x14b   : > { %497 = vadd.xlane.f32.xlu0 %v496_v52 }
 0x1d4   : > { %v498_v53 = vpop.xlane.xlu0 %497 }
 0x1d5   : > { %v499_v54 = vrot.slane %v498_v53, 4 }
 0x1d7   : > { %v500_v55 = vadd.f32 %v499_v54, %v498_v53 }
 0x1d9   : > { %v501_v56 = vrot.slane %v500_v55, 2 }
 0x1db   : > { %v502_v57 = vadd.f32 %v501_v56, %v500_v55 }
 0x1dd   : > { %v503_v58 = vrot.slane %v502_v57, 1 }
 0x1df   : > { %v504_v59 = vadd.f32 %v503_v58, %v502_v57  ;;  %v1624_v58 = vld [vmem:[%s2478_s1] sm:$0x3] }
 0x1e1   : > { %2093 = vpush %v504_v59 }
 0x212   : > { %s2094_s29 = spop %2093 }
 0x213   : > { %v2381_v60 = vstv %s2094_s29 }
 0x214   : > { %2159 = vrcp.f32 %v2381_v60  ;;  %vm1504_vm5 = vcmp.eq.f32.partialorder %v2381_v60, inf  ;;  %vm1506_vm6 = vcmp.eq.f32.partialorder %v2381_v60, 0.0 }
 0x215   : > { %2161 = vrsqrt.f32 %v2381_v60 }
 0x221   : > { %v2160_v63 = vpop.eup %2159 }
 0x222   : > { %v508_v0 = vmul.f32 %v2160_v63, %v477_v42  ;;  %v509_v2 = vmul.f32 %v2160_v63, %v478_v47  ;;  %v2162_v43 = vpop.eup %2161  ;;  %v1507_v47 = vand.u32 2147483648, %v2381_v60 }
 0x223   : > { %v1503_v44 = vmul.f32 %v2162_v43, %v2381_v60 }
 0x224   : > { %v510_v3 = vsub.f32 %v2384_v61, %v508_v0  ;;  %1994 = vmatprep.mubr.msk.f32.mxu1 %vm266_vm2, %v508_v0  ;;  %v511_v4 = vsub.f32 %v2386_v62, %v509_v2 }
 0x225   : > { %v1505_v46 = vsel %vm1504_vm5, %v2381_v60, %v1503_v44  ;;  %v1700_v60 = vld [vmem:[%s2480_s3] sm:$0xff] }
 0x226   : > { %v512_v5 = vmul.f32 0.5, %v510_v3  ;;  %v513_v6 = vmul.f32 0.5, %v511_v4  ;;  %v1508_v50 = vsel %vm1506_vm6, %v1507_v47, %v1505_v46  ;;  %v1703_v3 = vld [vmem:[%s2481_s4 + $0x8] sm:$0xff] }
 0x228   : > { %1990 = vmatprep.subr.mxu1 %v513_v6  ;;  %2001 = vmatprep.mubr.msk.f32.mxu0 %vm266_vm2, %v512_v5 }
 0x229   : > { %1991 = vmatpush3.msra.mxu1 %v513_v6 }
 0x22a   : > { %1992 = vmatprep.subr.mxu1 %v512_v5 }
 0x22b   : > { %1993 = vmatpush3.msra.mxu1 %v512_v5 }
 0x22c   : > { %1995 = vmatmul.mubr.msk.f32.vlgmr.msra.gmra.mxu1 %vm266_vm2, %v509_v2 }
 0x2ec   : > { %v1996_v7 = vpop.f32.mrf.mxu1 }
 0x2ed   : > { %1997 = vmatprep.subr.mxu0 %v1996_v7 }
 0x2ee   : > { %v586_v8 = vpop.f32.mrf.mxu1  ;;  %1998 = vmatpush3.msra.mxu0 %v1996_v7 }
 0x2ef   : > { %1999 = vmatprep.subr.mxu0 %v586_v8  ;;  %2008 = vmatprep.mubr.msk.f32.mxu1 %vm266_vm2, %v586_v8 }
 0x2f0   : > { %2000 = vmatpush3.msra.mxu0 %v586_v8 }
 0x2f1   : > { %2002 = vmatmul.mubr.msk.f32.vlgmr.msra.gmra.mxu0 %vm266_vm2, %v513_v6  ;;  %2011 = vmatprep.subr.mxu0 %v513_v6 }
 0x2f2   : > { %2012 = vmatpush3.msra.mxu0 %v513_v6 }
 0x2f3   : > { %2013 = vmatprep.subr.mxu0 %v512_v5 }
 0x2f4   : > { %2014 = vmatpush3.msra.mxu0 %v512_v5  ;;  %v1702_v5 = vld [vmem:[%s2481_s4] sm:$0xff] }
 0x3b1   : > { %v2003_v9 = vpop.f32.mrf.mxu0 }
 0x3b2   : > { %v677_v10 = vsub.f32 %v2386_v62, %v2003_v9 }
 0x3b3   : > { %v667_v11 = vpop.f32.mrf.mxu0 }
 0x3b4   : > { %v679_v12 = vmul.f32 0.5, %v677_v10  ;;  %v676_v13 = vsub.f32 %v2384_v61, %v667_v11 }
 0x3b6   : > { %v678_v14 = vmul.f32 0.5, %v676_v13  ;;  %2004 = vmatprep.subr.mxu1 %v679_v12 }
 0x3b7   : > { %2005 = vmatpush3.msra.mxu1 %v679_v12 }
 0x3b8   : > { %2006 = vmatprep.subr.mxu1 %v678_v14  ;;  %2015 = vmatprep.mubr.msk.f32.mxu0 %vm266_vm2, %v678_v14 }
 0x3b9   : > { %2007 = vmatpush3.msra.mxu1 %v678_v14  ;;  %2016 = vmatmul.mubr.msk.f32.vlgmr.msra.gmra.mxu0 %vm266_vm2, %v679_v12 }
 0x3ba   : > { %2009 = vmatmul.mubr.msk.f32.vlgmr.msra.gmra.mxu1 %vm266_vm2, %v1996_v7 }
 0x479   : > { %v2017_v15 = vpop.f32.mrf.mxu0 }
 0x47a   : > { %v2010_v16 = vpop.f32.mrf.mxu1 }
 0x47b   : > { %v833_v17 = vpop.f32.mrf.mxu0  ;;  %2018 = vmatprep.subr.mxu1 %v2010_v16 }
 0x47c   : > { %v752_v18 = vpop.f32.mrf.mxu1  ;;  %2019 = vmatpush3.msra.mxu1 %v2010_v16  ;;  %2022 = vmatprep.mubr.msk.f32.mxu1 %vm266_vm2, %v833_v17 }
 0x47d   : > { %2020 = vmatprep.subr.mxu1 %v752_v18  ;;  %2029 = vmatprep.mubr.msk.f32.mxu0 %vm266_vm2, %v752_v18 }
 0x47e   : > { %2021 = vmatpush3.msra.mxu1 %v752_v18 }
 0x47f   : > { %2023 = vmatmul.mubr.msk.f32.vlgmr.msra.gmra.mxu1 %vm266_vm2, %v2017_v15  ;;  %2032 = vmatprep.subr.mxu1 %v2017_v15 }
 0x480   : > { %2033 = vmatpush3.msra.mxu1 %v2017_v15 }
 0x481   : > { %2034 = vmatprep.subr.mxu1 %v833_v17 }
 0x482   : > { %2035 = vmatpush3.msra.mxu1 %v833_v17 }
 0x53f   : > { %v2024_v19 = vpop.f32.mrf.mxu1 }
 0x540   : > { %v924_v20 = vsub.f32 %v2386_v62, %v2024_v19 }
 0x541   : > { %v914_v21 = vpop.f32.mrf.mxu1 }
 0x542   : > { %v926_v22 = vmul.f32 0.5, %v924_v20  ;;  %v923_v23 = vsub.f32 %v2384_v61, %v914_v21 }
 0x544   : > { %v925_v24 = vmul.f32 0.5, %v923_v23  ;;  %2025 = vmatprep.subr.mxu0 %v926_v22 }
 0x545   : > { %2026 = vmatpush3.msra.mxu0 %v926_v22 }
 0x546   : > { %2027 = vmatprep.subr.mxu0 %v925_v24  ;;  %2036 = vmatprep.mubr.msk.f32.mxu1 %vm266_vm2, %v925_v24 }
 0x547   : > { %2028 = vmatpush3.msra.mxu0 %v925_v24  ;;  %2037 = vmatmul.mubr.msk.f32.vlgmr.msra.gmra.mxu1 %vm266_vm2, %v926_v22 }
 0x548   : > { %2030 = vmatmul.mubr.msk.f32.vlgmr.msra.gmra.mxu0 %vm266_vm2, %v2010_v16 }
 0x607   : > { %v2038_v25 = vpop.f32.mrf.mxu1 }
 0x608   : > { %v2031_v26 = vpop.f32.mrf.mxu0 }
 0x609   : > { %v1080_v27 = vpop.f32.mrf.mxu1  ;;  %2039 = vmatprep.subr.mxu0 %v2031_v26 }
 0x60a   : > { %v999_v28 = vpop.f32.mrf.mxu0  ;;  %2040 = vmatpush3.msra.mxu0 %v2031_v26  ;;  %2043 = vmatprep.mubr.msk.f32.mxu0 %vm266_vm2, %v1080_v27 }
 0x60b   : > { %2041 = vmatprep.subr.mxu0 %v999_v28  ;;  %2050 = vmatprep.mubr.msk.f32.mxu1 %vm266_vm2, %v999_v28 }
 0x60c   : > { %2042 = vmatpush3.msra.mxu0 %v999_v28 }
 0x60d   : > { %2044 = vmatmul.mubr.msk.f32.vlgmr.msra.gmra.mxu0 %vm266_vm2, %v2038_v25  ;;  %2053 = vmatprep.subr.mxu0 %v2038_v25 }
 0x60e   : > { %2054 = vmatpush3.msra.mxu0 %v2038_v25 }
 0x60f   : > { %2055 = vmatprep.subr.mxu0 %v1080_v27 }
 0x610   : > { %2056 = vmatpush3.msra.mxu0 %v1080_v27 }
 0x6cd   : > { %v2045_v29 = vpop.f32.mrf.mxu0 }
 0x6ce   : > { %v1171_v30 = vsub.f32 %v2386_v62, %v2045_v29 }
 0x6cf   : > { %v1161_v31 = vpop.f32.mrf.mxu0 }
 0x6d0   : > { %v1173_v32 = vmul.f32 0.5, %v1171_v30  ;;  %v1170_v33 = vsub.f32 %v2384_v61, %v1161_v31 }
 0x6d2   : > { %v1172_v34 = vmul.f32 0.5, %v1170_v33  ;;  %2046 = vmatprep.subr.mxu1 %v1173_v32 }
 0x6d3   : > { %2047 = vmatpush3.msra.mxu1 %v1173_v32 }
 0x6d4   : > { %2048 = vmatprep.subr.mxu1 %v1172_v34  ;;  %2057 = vmatprep.mubr.msk.f32.mxu0 %vm266_vm2, %v1172_v34 }
 0x6d5   : > { %2049 = vmatpush3.msra.mxu1 %v1172_v34  ;;  %2058 = vmatmul.mubr.msk.f32.vlgmr.msra.gmra.mxu0 %vm266_vm2, %v1173_v32 }
 0x6d6   : > { %2051 = vmatmul.mubr.msk.f32.vlgmr.msra.gmra.mxu1 %vm266_vm2, %v2031_v26 }
 0x795   : > { %v2059_v35 = vpop.f32.mrf.mxu0 }
 0x796   : > { %v2052_v36 = vpop.f32.mrf.mxu1 }
 0x797   : > { %v1327_v37 = vpop.f32.mrf.mxu0  ;;  %2060 = vmatprep.subr.mxu1 %v2052_v36 }
 0x798   : > { %v1246_v38 = vpop.f32.mrf.mxu1  ;;  %2061 = vmatpush3.msra.mxu1 %v2052_v36  ;;  %2064 = vmatprep.mubr.msk.f32.mxu1 %vm266_vm2, %v1327_v37 }
 0x799   : > { %2062 = vmatprep.subr.mxu1 %v1246_v38  ;;  %2071 = vmatprep.mubr.msk.f32.mxu0 %vm266_vm2, %v1246_v38 }
 0x79a   : > { %2063 = vmatpush3.msra.mxu1 %v1246_v38 }
 0x79b   : > { %2065 = vmatmul.mubr.msk.f32.vlgmr.msra.gmra.mxu1 %vm266_vm2, %v2059_v35  ;;  %2074 = vmatprep.subr.mxu1 %v2257_v51 }
 0x79c   : > { %2075 = vmatpush3.msra.mxu1 %v2257_v51 }
 0x79d   : > { %2076 = vmatprep.subr.mxu1 %v2257_v51 }
 0x79e   : > { %2077 = vmatpush3.msra.mxu1 %v2257_v51 }
 0x85b   : > { %v2066_v39 = vpop.f32.mrf.mxu1 }
 0x85c   : > { %v1418_v40 = vsub.f32 %v2386_v62, %v2066_v39 }
 0x85d   : > { %v1408_v41 = vpop.f32.mrf.mxu1 }
 0x85e   : > { %v1417_v42 = vsub.f32 %v2384_v61, %v1408_v41  ;;  %2067 = vmatprep.subr.mxu0 %v1418_v40  ;;  %v1625_v61 = vld [vmem:[%s2479_s2] sm:$0x3] }
 0x85f   : > { %2068 = vmatpush3.msra.mxu0 %v1418_v40 }
 0x860   : > { %2069 = vmatprep.subr.mxu0 %v1417_v42 }
 0x861   : > { %2070 = vmatpush3.msra.mxu0 %v1417_v42 }
 0x862   : > { %2072 = vmatmul.mubr.msk.f32.vlgmr.msra.gmra.mxu0 %vm266_vm2, %v2052_v36  ;;  %2081 = vmatprep.subr.mxu0 %v2255_v1 }
 0x863   : > { %2085 = vmatprep.mubr.msk.f32.mxu0 %vm2258_vm7, %v2255_v1 }
 0x922   : > { %v2073_v45 = vpop.f32.mrf.mxu0 }
 0x923   : > { %v1501_v52 = vmul.f32 0.5, %v2073_v45 }
 0x924   : > { %v1491_v48 = vpop.f32.mrf.mxu0 }
 0x925   : > { %v1500_v49 = vmul.f32 0.5, %v1491_v48  ;;  %v1510_v54 = vmul.f32 %v1508_v50, %v1501_v52 }
 0x927   : > { %v1509_v53 = vmul.f32 %v1508_v50, %v1500_v49 }
 0x929   : > { %1511 = vxpose.xlu1.b32.start [1/2] (short) (narrow) %v1509_v53, 16 }
 0x92d   : > { %1512 = vxpose.xlu1.b32.end [2/2] (short) (narrow) %v1510_v54, 16 }
 0x9a5   : > { %v1527_v55 = vpop.trf.xlu1 }
 0x9a6   : > { %2078 = vmatprep.mubr.msk.f32.mxu1 %vm266_vm2, %v1527_v55 }
 0x9a9   : > { %v1528_v56 = vpop.trf.xlu1 }
 0x9aa   : > { %2079 = vmatmul.mubr.msk.f32.vlgmr.msra.gmra.mxu1 %vm266_vm2, %v1528_v56 }
 0x9ab   : > { %2090 = vmatprep.mubr.msk.f32.mxu1 %vm1704_vm8, %v1700_v60 }
 0xa6a   : > { %v2080_v57 = vpop.f32.mrf.mxu1 }
 0xa6b   : > { %2082 = vmatpush3.msra.mxu0 %v2080_v57 }
 0xa6c   : > { %v1615_v59 = vpop.f32.mrf.mxu1  ;;  %2083 = vmatprep.subr.mxu0 %v2255_v1  ;;  %v1701_v1 = vld [vmem:[%s2480_s3 + $0x8] sm:$0xff] }
 0xa6d   : > { %2084 = vmatpush3.msra.mxu0 %v1615_v59 }
 0xa6e   : > { %2086 = vmatmul.mubr.msk.f32.vlgmr.msra.gmra.mxu0 %vm266_vm2, %v1624_v58 }
 0xb2e   : > { %v1695_v62 = vpop.f32.mrf.mxu0 }
 0xb2f   : > { %v1696_v63 = vadd.f32 %v1695_v62, %v1625_v61 }
 0xb30   : > { %v2087_v0 = vpop.f32.mrf.mxu0 }
 0xb31   : > { %v1699_v2 = vmax.f32 %v1696_v63, 0.0 }
 0xb33   : > { %2088 = vmatprep.subr.msk.mxu1 %vm1711_vm9, %v1699_v2 }
 0xb34   : > { %2089 = vmatpush3.msk.msra.mxu1 %vm1711_vm9, %v1699_v2 }
 0xb35   : > { %2091 = vmatmul.mubr.msk.f32.vlgmr.msra.gmra.mxu1 %vm1704_vm8, %v1701_v1 }
 0xbf5   : > { %v2092_v4 = vpop.f32.mrf.mxu1 }
 0xbf6   : > { %v1787_v6 = vadd.f32 %v2092_v4, %v1703_v3 }
 0xbf7   : > { %v1781_v7 = vpop.f32.mrf.mxu1 }
 0xbf8   : > { %v1927_v8 = vmul.f32 -1.442695, %v1787_v6  ;;  %v1782_v9 = vadd.f32 %v1781_v7, %v1702_v5 }
 0xbfa   : > { %2163 = vpow2.f32 %v1927_v8  ;;  %v1926_v10 = vmul.f32 -1.442695, %v1782_v9 }
 0xbfc   : > { %2165 = vpow2.f32 %v1926_v10 }
 0xc07   : > { %v2164_v11 = vpop.eup %2163 }
 0xc08   : > { %v1797_v12 = vadd.f32 1.0, %v2164_v11 }
 0xc09   : > { %v2166_v13 = vpop.eup %2165 }
 0xc0a   : > { %2167 = vrcp.f32 %v1797_v12  ;;  %v1796_v14 = vadd.f32 1.0, %v2166_v13 }
 0xc0c   : > { %2169 = vrcp.f32 %v1796_v14 }
 0xc17   : > { %v2168_v15 = vpop.eup %2167 }
 0xc18   : > { %1803 = vst.msk [vmem:[%s261_s7 + $0x8] sm:$0xff] %vm269_vm0, %v2168_v15 }
 0xc19   : > { %v2170_v16 = vpop.eup %2169 }
 0xc1a   : > { %1802 = vst.msk [vmem:[%s261_s7] sm:$0xff] %vm269_vm0, %v2170_v16 }
 0xc1b PF: > { %s18_s23 = sadd.s32 1, %s2249_s23   ;;  %s2486_s18 = smov %s2233_s19 }
 0xc1c   : > { %p15_p8 = scmp.ge.s32.totalorder %s18_s23, 4   ;;  %s2487_s19 = smov %s2237_s20 }
 0xc1d   : > { %s2488_s20 = smov %s2338_s30  ;;  %s2489_s21 = smov %s2245_s22 }
 0xc1e   : > { %s2490_s22 = smov %s2492_s25  ;;  %17 = sbr.rel (!%p15_p8) target bundleno = 4 (0x4), region = 88 }
 0xc23   :  { %1825 = vsyncpa [#allocation6], 1 }
 0xc24   :  { %1827 = vsyncpa [#allocation6 + $0x1], 1 }

</bundles_post_ra>
